<compile_context>
chip_gen: v5e
topology: v5e:2x2
jax: 0.10.0
libtpu: 0.0.40
codegen_flags: <defaults>
</compile_context>

<pallas_src>
import functools

import jax
import jax.numpy as jnp
import numpy as np
from jax.experimental import pallas as pl
from jax.experimental.pallas import tpu as pltpu


# ----------------------------------------------------------------------------
# Relative position index (parameter-setup glue, mirrors the PyTorch __init__)
# ----------------------------------------------------------------------------
def make_relative_position_index(window_size):
    Wh, Ww, Wt = window_size
    coords = np.stack(
        np.meshgrid(np.arange(Wh), np.arange(Ww), np.arange(Wt), indexing="ij")
    )  # (3, Wh, Ww, Wt)
    coords_flatten = coords.reshape(3, -1)  # (3, N)
    rel = coords_flatten[:, :, None] - coords_flatten[:, None, :]  # (3, N, N)
    rel = rel.transpose(1, 2, 0).copy()  # (N, N, 3)
    rel[:, :, 0] += Wh - 1
    rel[:, :, 1] += Ww - 1
    rel[:, :, 2] += Wt - 1
    rel[:, :, 0] *= (2 * Ww - 1) * (2 * Wt - 1)
    rel[:, :, 1] *= 2 * Wt - 1
    return rel.sum(-1)  # (N, N) int


# ----------------------------------------------------------------------------
# Window-batch size heuristic.
#   - multiple of nWb (so the mask pattern repeats exactly inside every block)
#   - divisor of B_
#   - (BW*N, C) block obeys the 8-row sublane rule unless it spans the whole array
#   - N^2-aware VMEM working-set budget (attention temporaries dominate for big windows)
#   - prefers >= 2 grid steps (v7x two-TC sharding + DMA/compute pipelining)
# ----------------------------------------------------------------------------
def _pick_num_windows(B_, N, C, H, nWb, budget_bytes=10 << 20, min_grid=2):
    # per-window working set (bytes): x/out double-buffered blocks, f32+bf16 qkv,
    # q/k/v copies, o/o_slab/y  (~48 B per N*C element)  +  two (H, N, N) f32 attn buffers.
    per_window = N * C * 48 + 8 * H * N * N

    cands = [nWb * m for m in range(1, B_ // nWb + 1) if B_ % (nWb * m) == 0]

    def sublane_ok(bw):
        return (bw == B_) or ((bw * N) % 8 == 0)

    legal = [bw for bw in cands if sublane_ok(bw)]
    good = [bw for bw in legal if bw * per_window <= budget_bytes]
    pref = [bw for bw in good if (B_ // bw) >= min_grid]
    if pref:
        return max(pref)
    if good:
        return max(good)
    # fall back to the smallest legal block (minimum VMEM); cands always contains B_
    # and sublane_ok(B_) is True, so `legal` is never empty.
    return min(legal)


# ----------------------------------------------------------------------------
# Pallas kernel: BW windows per grid step, heads batched into one einsum stream.
# ----------------------------------------------------------------------------
def _window_attn_kernel(x_ref, wqkv_ref, bqkv_ref, rpb_ref, mask_ref,
                        wproj_ref, bproj_ref, o_ref, *,
                        num_heads, num_windows, C, N, D, nWb, has_mask):
    H, BW = num_heads, num_windows
    G = BW // nWb

    x = x_ref[...]                                         # (BW*N, C) bf16

    # QKV projection on the MXU (f32 accumulate). scale is pre-folded into the
    # q columns of wqkv/bqkv. Down-cast to bf16 exactly once.
    qkv = (jnp.dot(x, wqkv_ref[...], preferred_element_type=jnp.float32)
           + bqkv_ref[...]).astype(jnp.bfloat16)           # (BW*N, 3C)

    # Build head-major batched operands (H*BW, N, D) using only lane slices,
    # a leading-dim concat and leading-dim reshapes (no lane-splitting reshape).
    def head_major(base):
        cols = jnp.concatenate(
            [qkv[:, base + h * D: base + (h + 1) * D] for h in range(H)], axis=0)
        return cols.reshape(H * BW, N, D)                  # heads major, windows minor

    q = head_major(0)
    k = head_major(C)
    v = head_major(2 * C)

    # Window+head batched q @ k^T (bf16 operands, f32 accumulation).
    attn = jnp.einsum("bnd,bmd->bnm", q, k,
                      preferred_element_type=jnp.float32)  # (H*BW, N, N)

    # Relative-position bias, broadcast over windows.
    attn = attn.reshape(H, BW, N, N) + rpb_ref[...][:, None]
    if has_mask:
        # Mask pattern repeats every nWb windows inside the slab (BW % nWb == 0 and
        # slabs start at multiples of nWb because B_ % BW == 0).
        attn = (attn.reshape(H * G, nWb, N, N) + mask_ref[...][None]).reshape(H, BW, N, N)
    attn = attn.reshape(H * BW, N, N)

    # Softmax in f32 with flash-style deferred normalization.
    attn = attn - jnp.max(attn, axis=-1, keepdims=True)
    p = jnp.exp(attn)                                      # unnormalized probs
    denom = jnp.sum(p, axis=-1, keepdims=True)             # (H*BW, N, 1)

    o = jnp.einsum("bnm,bmd->bnd", p.astype(jnp.bfloat16), v,
                   preferred_element_type=jnp.float32)     # (H*BW, N, D)
    o = o * pl.reciprocal(denom, approx=True)              # deferred normalization (EUP)

    # Re-assemble the head-concatenated (BW*N, C) slab (lane concat, XLU-side work)
    # and run ONE full-C output projection (K = C).
    o = o.reshape(H, BW * N, D)
    o_slab = jnp.concatenate([o[h] for h in range(H)], axis=-1).astype(jnp.bfloat16)
    y = (jnp.dot(o_slab, wproj_ref[...], preferred_element_type=jnp.float32)
         + bproj_ref[...])
    o_ref[...] = y.astype(o_ref.dtype)


# ----------------------------------------------------------------------------
# Wrapper
# ----------------------------------------------------------------------------
def window_attention(x, params, window_size, num_heads, mask=None):
    B_, N, C = x.shape
    assert N == window_size[0] * window_size[1] * window_size[2]
    assert C % num_heads == 0
    D = C // num_heads
    scale = float(D) ** (-0.5)

    # (H, N, N) relative-position bias (kept separate from the mask — no nW*H blow-up).
    rel_index = jnp.asarray(make_relative_position_index(window_size))  # (N, N)
    rpb = params["rpb_table"][rel_index.reshape(-1)].reshape(N, N, num_heads)
    rpb = jnp.transpose(rpb, (2, 0, 1)).astype(jnp.float32)             # (H, N, N)

    if mask is not None:
        nWb = int(mask.shape[0])
        # x rows must be ordered (batch, window) with the window index varying fastest.
        assert B_ % nWb == 0
        mask_arr = mask.astype(jnp.float32)                             # (nW, N, N)
        has_mask = True
    else:
        nWb = 1
        mask_arr = jnp.zeros((1, N, N), jnp.float32)
        has_mask = False

    BW = _pick_num_windows(B_, N, C, num_heads, nWb)   # windows per grid step
    assert B_ % BW == 0 and BW % nWb == 0
    grid = (B_ // BW,)

    # Weights: fold the qk scale into the q columns of W_qkv^T and b_qkv.
    qscale = jnp.concatenate([jnp.full((C,), scale, jnp.float32),
                              jnp.ones((2 * C,), jnp.float32)])
    wqkv_t = (jnp.transpose(params["wqkv"]).astype(jnp.float32)
              * qscale[None, :]).astype(jnp.bfloat16)                   # (C, 3C)
    bqkv = (params["bqkv"].astype(jnp.float32) * qscale).reshape(1, 3 * C)
    wproj_t = jnp.transpose(params["wproj"]).astype(jnp.bfloat16)       # (C, C)
    bproj = params["bproj"].reshape(1, C).astype(jnp.float32)

    # Flatten tokens: (B_*N, C) slabs give contiguous DMAs and a large MXU M-dim.
    x_flat = x.reshape(B_ * N, C).astype(jnp.bfloat16)

    kernel = functools.partial(
        _window_attn_kernel,
        num_heads=num_heads, num_windows=BW, C=C, N=N, D=D, nWb=nWb, has_mask=has_mask,
    )

    out_flat = pl.pallas_call(
        kernel,
        out_shape=jax.ShapeDtypeStruct((B_ * N, C), x.dtype),
        grid=grid,
        in_specs=[
            pl.BlockSpec((BW * N, C), lambda g: (g, 0)),            # x slab
            pl.BlockSpec((C, 3 * C), lambda g: (0, 0)),             # W_qkv^T (resident)
            pl.BlockSpec((1, 3 * C), lambda g: (0, 0)),             # b_qkv
            pl.BlockSpec((num_heads, N, N), lambda g: (0, 0, 0)),   # rel-pos bias
            pl.BlockSpec((nWb, N, N), lambda g: (0, 0, 0)),         # mask (or 1-window zeros)
            pl.BlockSpec((C, C), lambda g: (0, 0)),                 # W_proj^T
            pl.BlockSpec((1, C), lambda g: (0, 0)),                 # b_proj
        ],
        out_specs=pl.BlockSpec((BW * N, C), lambda g: (g, 0)),
        compiler_params=pltpu.CompilerParams(
            dimension_semantics=("parallel",),
            vmem_limit_bytes=32 * 1024 * 1024,
        ),
    )(x_flat, wqkv_t, bqkv, rpb, mask_arr, wproj_t, bproj)

    return out_flat.reshape(B_, N, C)


# ----------------------------------------------------------------------------
# Pure-JAX reference (mirrors the PyTorch forward) for correctness checking
# ----------------------------------------------------------------------------
def window_attention_ref(x, params, window_size, num_heads, mask=None):
    B_, N, C = x.shape
    D = C // num_heads
    scale = float(D) ** (-0.5)

    qkv = x @ params["wqkv"].T + params["bqkv"]
    qkv = qkv.reshape(B_, N, 3, num_heads, D).transpose(2, 0, 3, 1, 4)
    q, k, v = qkv[0] * scale, qkv[1], qkv[2]
    attn = q @ jnp.swapaxes(k, -2, -1)  # (B_, H, N, N)

    rel_index = jnp.asarray(make_relative_position_index(window_size))
    rel_bias = params["rpb_table"][rel_index.reshape(-1)].reshape(N, N, num_heads)
    rel_bias = jnp.transpose(rel_bias, (2, 0, 1))
    attn = attn + rel_bias[None]

    if mask is not None:
        nW = mask.shape[0]
        attn = attn.reshape(B_ // nW, nW, num_heads, N, N) + mask[None, :, None]
        attn = attn.reshape(-1, num_heads, N, N)

    attn = jax.nn.softmax(attn, axis=-1)
    out = (attn @ v).transpose(0, 2, 1, 3).reshape(B_, N, C)
    return out @ params["wproj"].T + params["bproj"]


# ----------------------------------------------------------------------------
if __name__ == "__main__":
    # Small, module-consistent shapes.
    dim = 32
    num_heads = 4
    window_size = (2, 2, 2)
    N = window_size[0] * window_size[1] * window_size[2]   # 8 tokens per window
    nW = 2
    B_ = 4                                                  # (batch=2) * (nW=2) windows

    key = jax.random.PRNGKey(0)
    k_x, k_rpb, k_wqkv, k_bqkv, k_wproj, k_bproj, k_mask = jax.random.split(key, 7)

    num_rel = (2 * window_size[0] - 1) * (2 * window_size[1] - 1) * (2 * window_size[2] - 1)
    params = {
        # trunc_normal_(std=0.02)
        "rpb_table": 0.02 * jax.random.truncated_normal(
            k_rpb, -2.0, 2.0, (num_rel, num_heads), jnp.float32),
        # nn.Linear(dim, 3*dim): weight (out, in), bias (out,)
        "wqkv": 0.1 * jax.random.normal(k_wqkv, (3 * dim, dim), jnp.float32),
        "bqkv": 0.1 * jax.random.normal(k_bqkv, (3 * dim,), jnp.float32),
        # nn.Linear(dim, dim)
        "wproj": 0.1 * jax.random.normal(k_wproj, (dim, dim), jnp.float32),
        "bproj": 0.1 * jax.random.normal(k_bproj, (dim,), jnp.float32),
    }

    x = jax.random.normal(k_x, (B_, N, dim), jnp.float32)
    mask = jax.random.normal(k_mask, (nW, N, N), jnp.float32)

    # bf16 MXU operands + approx reciprocal => looser tolerance than pure-f32.
    rtol = atol = 3e-2

    # Path 1: mask=None
    out = window_attention(x, params, window_size, num_heads, mask=None)
    out = jax.block_until_ready(out)
    ref = window_attention_ref(x, params, window_size, num_heads, mask=None)
    np.testing.assert_allclose(np.asarray(out), np.asarray(ref), rtol=rtol, atol=atol)

    # Path 2: with shifted-window attention mask
    out_m = window_attention(x, params, window_size, num_heads, mask=mask)
    out_m = jax.block_until_ready(out_m)
    ref_m = window_attention_ref(x, params, window_size, num_heads, mask=mask)
    np.testing.assert_allclose(np.asarray(out_m), np.asarray(ref_m), rtol=rtol, atol=atol)

    print("KERNEL_OK")
</pallas_src>

<mosaic_0001>
module attributes {stable_mosaic.version = 11 : i64} {
  func.func @_window_attn_kernel(%arg0: i32, %arg1: memref<16x32xbf16, #tpu.memory_space<vmem>>, %arg2: memref<32x96xbf16, #tpu.memory_space<vmem>>, %arg3: memref<1x96xf32, #tpu.memory_space<vmem>>, %arg4: memref<4x8x8xf32, #tpu.memory_space<vmem>>, %arg5: memref<1x8x8xf32, #tpu.memory_space<vmem>>, %arg6: memref<32x32xbf16, #tpu.memory_space<vmem>>, %arg7: memref<1x32xf32, #tpu.memory_space<vmem>>, %arg8: memref<16x32xf32, #tpu.memory_space<vmem>>) attributes {dimension_semantics = [#tpu.dimension_semantics<parallel>], iteration_bounds = array<i64: 2>, scalar_prefetch = 0 : i64, scratch_operands = 0 : i64, tpu.core_type = #tpu.core_type<tc>, window_params = [{transform_indices = @transform_0, window_bounds = array<i64: 16, 32>}, {pipeline_mode = #tpu.pipeline_mode<synchronous>, transform_indices = @transform_1, window_bounds = array<i64: 32, 96>}, {pipeline_mode = #tpu.pipeline_mode<synchronous>, transform_indices = @transform_2, window_bounds = array<i64: 1, 96>}, {pipeline_mode = #tpu.pipeline_mode<synchronous>, transform_indices = @transform_3, window_bounds = array<i64: 4, 8, 8>}, {pipeline_mode = #tpu.pipeline_mode<synchronous>, transform_indices = @transform_4, window_bounds = array<i64: 1, 8, 8>}, {pipeline_mode = #tpu.pipeline_mode<synchronous>, transform_indices = @transform_5, window_bounds = array<i64: 32, 32>}, {pipeline_mode = #tpu.pipeline_mode<synchronous>, transform_indices = @transform_6, window_bounds = array<i64: 1, 32>}, {transform_indices = @transform_7, window_bounds = array<i64: 16, 32>}]} {
    %c0 = arith.constant 0 : index
    %c0_0 = arith.constant 0 : index
    %0 = vector.load %arg1[%c0, %c0_0] : memref<16x32xbf16, #tpu.memory_space<vmem>>, vector<16x32xbf16>
    %c0_1 = arith.constant 0 : index
    %c0_2 = arith.constant 0 : index
    %1 = vector.load %arg2[%c0_1, %c0_2] : memref<32x96xbf16, #tpu.memory_space<vmem>>, vector<32x96xbf16>
    %cst = arith.constant dense<0.000000e+00> : vector<16x96xf32>
    %2 = tpu.matmul %0, %1, %cst {dimension_numbers = #tpu.dot_dimension_numbers<[1], [0], [0], [1], [0, 0, 1, 1], [], []>} : vector<16x32xbf16>, vector<32x96xbf16>, vector<16x96xf32> -> vector<16x96xf32>
    %c0_3 = arith.constant 0 : index
    %c0_4 = arith.constant 0 : index
    %3 = vector.load %arg3[%c0_3, %c0_4] : memref<1x96xf32, #tpu.memory_space<vmem>>, vector<1x96xf32>
    %4 = vector.broadcast %3 : vector<1x96xf32> to vector<16x96xf32>
    %5 = arith.addf %2, %4 : vector<16x96xf32>
    %6 = arith.truncf %5 : vector<16x96xf32> to vector<16x96xbf16>
    %7 = vector.extract_strided_slice %6 {offsets = [0, 0], sizes = [16, 8], strides = [1, 1]} : vector<16x96xbf16> to vector<16x8xbf16>
    %8 = vector.extract_strided_slice %6 {offsets = [0, 8], sizes = [16, 8], strides = [1, 1]} : vector<16x96xbf16> to vector<16x8xbf16>
    %9 = vector.extract_strided_slice %6 {offsets = [0, 16], sizes = [16, 8], strides = [1, 1]} : vector<16x96xbf16> to vector<16x8xbf16>
    %10 = vector.extract_strided_slice %6 {offsets = [0, 24], sizes = [16, 8], strides = [1, 1]} : vector<16x96xbf16> to vector<16x8xbf16>
    %11 = tpu.concatenate %7, %8, %9, %10 in 0 : vector<16x8xbf16>, vector<16x8xbf16>, vector<16x8xbf16>, vector<16x8xbf16> -> vector<64x8xbf16>
    %12 = vector.shape_cast %11 : vector<64x8xbf16> to vector<8x8x8xbf16>
    %13 = vector.extract_strided_slice %6 {offsets = [0, 32], sizes = [16, 8], strides = [1, 1]} : vector<16x96xbf16> to vector<16x8xbf16>
    %14 = vector.extract_strided_slice %6 {offsets = [0, 40], sizes = [16, 8], strides = [1, 1]} : vector<16x96xbf16> to vector<16x8xbf16>
    %15 = vector.extract_strided_slice %6 {offsets = [0, 48], sizes = [16, 8], strides = [1, 1]} : vector<16x96xbf16> to vector<16x8xbf16>
    %16 = vector.extract_strided_slice %6 {offsets = [0, 56], sizes = [16, 8], strides = [1, 1]} : vector<16x96xbf16> to vector<16x8xbf16>
    %17 = tpu.concatenate %13, %14, %15, %16 in 0 : vector<16x8xbf16>, vector<16x8xbf16>, vector<16x8xbf16>, vector<16x8xbf16> -> vector<64x8xbf16>
    %18 = vector.shape_cast %17 : vector<64x8xbf16> to vector<8x8x8xbf16>
    %19 = vector.extract_strided_slice %6 {offsets = [0, 64], sizes = [16, 8], strides = [1, 1]} : vector<16x96xbf16> to vector<16x8xbf16>
    %20 = vector.extract_strided_slice %6 {offsets = [0, 72], sizes = [16, 8], strides = [1, 1]} : vector<16x96xbf16> to vector<16x8xbf16>
    %21 = vector.extract_strided_slice %6 {offsets = [0, 80], sizes = [16, 8], strides = [1, 1]} : vector<16x96xbf16> to vector<16x8xbf16>
    %22 = vector.extract_strided_slice %6 {offsets = [0, 88], sizes = [16, 8], strides = [1, 1]} : vector<16x96xbf16> to vector<16x8xbf16>
    %23 = tpu.concatenate %19, %20, %21, %22 in 0 : vector<16x8xbf16>, vector<16x8xbf16>, vector<16x8xbf16>, vector<16x8xbf16> -> vector<64x8xbf16>
    %24 = vector.shape_cast %23 : vector<64x8xbf16> to vector<8x8x8xbf16>
    "tpu.trace_start"() <{level = 10 : i32, message = "bnd,bmd->bnm"}> : () -> ()
    %cst_5 = arith.constant dense<0.000000e+00> : vector<8x8x8xf32>
    %25 = tpu.matmul %12, %18, %cst_5 {dimension_numbers = #tpu.dot_dimension_numbers<[2], [2], [1], [1], [0, 0, 0, 1, 1, 1], [0], [0]>} : vector<8x8x8xbf16>, vector<8x8x8xbf16>, vector<8x8x8xf32> -> vector<8x8x8xf32>
    "tpu.trace_stop"() : () -> ()
    %26 = vector.shape_cast %25 : vector<8x8x8xf32> to vector<4x2x8x8xf32>
    %c0_6 = arith.constant 0 : index
    %c0_7 = arith.constant 0 : index
    %c0_8 = arith.constant 0 : index
    %27 = vector.load %arg4[%c0_6, %c0_7, %c0_8] : memref<4x8x8xf32, #tpu.memory_space<vmem>>, vector<4x8x8xf32>
    %28 = vector.shape_cast %27 : vector<4x8x8xf32> to vector<4x1x8x8xf32>
    %29 = vector.broadcast %28 : vector<4x1x8x8xf32> to vector<4x2x8x8xf32>
    %30 = arith.addf %26, %29 : vector<4x2x8x8xf32>
    %31 = vector.shape_cast %30 : vector<4x2x8x8xf32> to vector<8x8x8xf32>
    %cst_9 = arith.constant dense<0xFF800000> : vector<8x8xf32>
    %32 = vector.multi_reduction <maximumf>, %31, %cst_9 [2] : vector<8x8x8xf32> to vector<8x8xf32>
    %33 = vector.shape_cast %32 : vector<8x8xf32> to vector<8x8x1xf32>
    %34 = vector.broadcast %33 : vector<8x8x1xf32> to vector<8x8x8xf32>
    %35 = arith.subf %31, %34 : vector<8x8x8xf32>
    %36 = math.exp %35 : vector<8x8x8xf32>
    %cst_10 = arith.constant dense<0.000000e+00> : vector<8x8xf32>
    %37 = vector.multi_reduction <add>, %36, %cst_10 [2] : vector<8x8x8xf32> to vector<8x8xf32>
    %38 = vector.shape_cast %37 : vector<8x8xf32> to vector<8x8x1xf32>
    %39 = arith.truncf %36 : vector<8x8x8xf32> to vector<8x8x8xbf16>
    "tpu.trace_start"() <{level = 10 : i32, message = "bnm,bmd->bnd"}> : () -> ()
    %cst_11 = arith.constant dense<0.000000e+00> : vector<8x8x8xf32>
    %40 = tpu.matmul %39, %24, %cst_11 {dimension_numbers = #tpu.dot_dimension_numbers<[2], [1], [1], [2], [0, 0, 0, 1, 1, 2], [0], [0]>} : vector<8x8x8xbf16>, vector<8x8x8xbf16>, vector<8x8x8xf32> -> vector<8x8x8xf32>
    "tpu.trace_stop"() : () -> ()
    %41 = tpu.reciprocal %38 {approx = true} : vector<8x8x1xf32> -> vector<8x8x1xf32>
    %42 = vector.broadcast %41 : vector<8x8x1xf32> to vector<8x8x8xf32>
    %43 = arith.mulf %40, %42 : vector<8x8x8xf32>
    %44 = vector.shape_cast %43 : vector<8x8x8xf32> to vector<4x16x8xf32>
    %45 = vector.extract_strided_slice %44 {offsets = [0, 0, 0], sizes = [1, 16, 8], strides = [1, 1, 1]} : vector<4x16x8xf32> to vector<1x16x8xf32>
    %46 = vector.shape_cast %45 : vector<1x16x8xf32> to vector<16x8xf32>
    %47 = vector.extract_strided_slice %44 {offsets = [1, 0, 0], sizes = [1, 16, 8], strides = [1, 1, 1]} : vector<4x16x8xf32> to vector<1x16x8xf32>
    %48 = vector.shape_cast %47 : vector<1x16x8xf32> to vector<16x8xf32>
    %49 = vector.extract_strided_slice %44 {offsets = [2, 0, 0], sizes = [1, 16, 8], strides = [1, 1, 1]} : vector<4x16x8xf32> to vector<1x16x8xf32>
    %50 = vector.shape_cast %49 : vector<1x16x8xf32> to vector<16x8xf32>
    %51 = vector.extract_strided_slice %44 {offsets = [3, 0, 0], sizes = [1, 16, 8], strides = [1, 1, 1]} : vector<4x16x8xf32> to vector<1x16x8xf32>
    %52 = vector.shape_cast %51 : vector<1x16x8xf32> to vector<16x8xf32>
    %53 = tpu.concatenate %46, %48, %50, %52 in 1 : vector<16x8xf32>, vector<16x8xf32>, vector<16x8xf32>, vector<16x8xf32> -> vector<16x32xf32>
    %54 = arith.truncf %53 : vector<16x32xf32> to vector<16x32xbf16>
    %c0_12 = arith.constant 0 : index
    %c0_13 = arith.constant 0 : index
    %55 = vector.load %arg6[%c0_12, %c0_13] : memref<32x32xbf16, #tpu.memory_space<vmem>>, vector<32x32xbf16>
    %cst_14 = arith.constant dense<0.000000e+00> : vector<16x32xf32>
    %56 = tpu.matmul %54, %55, %cst_14 {dimension_numbers = #tpu.dot_dimension_numbers<[1], [0], [0], [1], [0, 0, 1, 1], [], []>} : vector<16x32xbf16>, vector<32x32xbf16>, vector<16x32xf32> -> vector<16x32xf32>
    %c0_15 = arith.constant 0 : index
    %c0_16 = arith.constant 0 : index
    %57 = vector.load %arg7[%c0_15, %c0_16] : memref<1x32xf32, #tpu.memory_space<vmem>>, vector<1x32xf32>
    %58 = vector.broadcast %57 : vector<1x32xf32> to vector<16x32xf32>
    %59 = arith.addf %56, %58 : vector<16x32xf32>
    %c0_17 = arith.constant 0 : index
    %c0_18 = arith.constant 0 : index
    %60 = vector.load %arg8[%c0_17, %c0_18] : memref<16x32xf32, #tpu.memory_space<vmem>>, vector<16x32xf32>
    tpu.vector_store %arg8[%c0_17, %c0_18], %59 {strides = array<i32>} : memref<16x32xf32, #tpu.memory_space<vmem>>, vector<16x32xf32>,
    return
  }
  func.func @transform_0(%arg0: i32) -> (i32, i32) {
    %c0_i32 = arith.constant 0 : i32
    %c0_i32_0 = arith.constant 0 : i32
    return %arg0, %c0_i32 : i32, i32
  }
  func.func @transform_1(%arg0: i32) -> (i32, i32) {
    %c0_i32 = arith.constant 0 : i32
    %c0_i32_0 = arith.constant 0 : i32
    %c0_i32_1 = arith.constant 0 : i32
    return %c0_i32, %c0_i32_0 : i32, i32
  }
  func.func @transform_2(%arg0: i32) -> (i32, i32) {
    %c0_i32 = arith.constant 0 : i32
    %c0_i32_0 = arith.constant 0 : i32
    %c0_i32_1 = arith.constant 0 : i32
    return %c0_i32, %c0_i32_0 : i32, i32
  }
  func.func @transform_3(%arg0: i32) -> (i32, i32, i32) {
    %c0_i32 = arith.constant 0 : i32
    %c0_i32_0 = arith.constant 0 : i32
    %c0_i32_1 = arith.constant 0 : i32
    %c0_i32_2 = arith.constant 0 : i32
    return %c0_i32, %c0_i32_0, %c0_i32_1 : i32, i32, i32
  }
  func.func @transform_4(%arg0: i32) -> (i32, i32, i32) {
    %c0_i32 = arith.constant 0 : i32
    %c0_i32_0 = arith.constant 0 : i32
    %c0_i32_1 = arith.constant 0 : i32
    %c0_i32_2 = arith.constant 0 : i32
    return %c0_i32, %c0_i32_0, %c0_i32_1 : i32, i32, i32
  }
  func.func @transform_5(%arg0: i32) -> (i32, i32) {
    %c0_i32 = arith.constant 0 : i32
    %c0_i32_0 = arith.constant 0 : i32
    %c0_i32_1 = arith.constant 0 : i32
    return %c0_i32, %c0_i32_0 : i32, i32
  }
  func.func @transform_6(%arg0: i32) -> (i32, i32) {
    %c0_i32 = arith.constant 0 : i32
    %c0_i32_0 = arith.constant 0 : i32
    %c0_i32_1 = arith.constant 0 : i32
    return %c0_i32, %c0_i32_0 : i32, i32
  }
  func.func @transform_7(%arg0: i32) -> (i32, i32) {
    %c0_i32 = arith.constant 0 : i32
    %c0_i32_0 = arith.constant 0 : i32
    return %arg0, %c0_i32 : i32, i32
  }
}

</mosaic_0001>

<bundles_post_ra>
// kernel: tpu_custom_call.1
= control target key start
LH: loop header
LB: loop body
LE: loop exit
PB: predicated region body
PF: predicated region fallthrough
CT: control target
= control target key end

     0   :  { %s1860_s0 = inlined_call_operand.hbm [shape: bf16[32,32], index: 0, kind: input, shape index: {}]   ;;  %s1861_s1 = inlined_call_operand.hbm [shape: bf16[32,96], index: 1, kind: input, shape index: {}]   ;;  %s1862_s2 = inlined_call_operand.vmem [shape: f32[1,96], index: 2, kind: input, shape index: {}]   ;;  %s1863_s3 = inlined_call_operand.hbm [shape: f32[4,8,8], index: 3, kind: input, shape index: {}]   ;;  %s1864_s4 = inlined_call_operand.hbm [shape: f32[1,8,8], index: 4, kind: input, shape index: {}]   ;;  %s1865_s5 = inlined_call_operand.hbm [shape: bf16[32,32], index: 5, kind: input, shape index: {}]   ;;  %s1866_s6 = inlined_call_operand.vmem [shape: f32[1,32], index: 6, kind: input, shape index: {}]   ;;  %s1867_s7 = inlined_call_operand.hbm [shape: f32[32,32], index: 7, kind: output, shape index: {}]  }
   0x1   :  { %1870 = sst [smem:[#allocation16_spill]] %s1861_s1 }
   0x2   :  { %12 = vsyncpa [#allocation3], 0 }
   0x3   :  { %14 = vsyncpa [#allocation3 + $0x1], 0 }
   0x4   :  { %15 = vsyncpa [#allocation6], 0 }
   0x5   :  { %16 = vsyncpa [#allocation9], 0 }
   0x6   :  { %17 = vsyncpa [#allocation4], 0 }
   0x7   :  { %19 = vsyncpa [#allocation4 + $0x1], 0  ;;  %s1582_s24 = smov 0   ;;  %s1584_s25 = smov 0  }
   0x8   :  { %s1586_s26 = smov 0   ;;  %s1588_s27 = smov 0  }
   0x9 LB: > { %s1603_s28 = sadd.s32 4294967295, %s1523_s27   ;;  %s1083_s29 = sadd.s32 4294967294, %s1523_s27   ;;  %s1523_s27 = sphi %s1588_s27, %s1884_s27   ;;  %s1519_s26 = sphi %s1586_s26, %s1883_s26   ;;  %s1515_s25 = sphi %s1584_s25, %s1882_s25   ;;  %s1511_s24 = sphi %s1582_s24, %s1881_s24  }
   0xa   : > { %p45_p0 = scmp.ne.s32.totalorder %s1515_s25, %s1511_s24  ;;  %p46_p1 = scmp.eq.s32.totalorder %s1603_s28, 0 }
   0xb   : > { %p195_p2 = scmp.eq.s32.totalorder %s1603_s28, 1  ;;  %p201_p3 = scmp.eq.s32.totalorder %s1083_s29, 1 }
   0xc   : > { %p1612_p4 = por %p46_p1, %p45_p0  ;;  %p1084_p5 = scmp.ge.s32.totalorder %s1523_s27, 1 }
   0xd   : > { %p1617_p6 = por %p201_p3, %p45_p0  ;;  %p208_p7 = scmp.lt.s32.totalorder %s1523_s27, 3 }
   0xe   : > { %s1873_s1 = sld [smem:[#allocation16_spill]]  ;;  %s1525_s13 = smov [#allocation5]  }
   0xf   : > { %p1625_p8 = pnand %p1084_p5, %p208_p7  ;;  %s221_s14 = sshll.u32 %s1525_s13, 4  ;;  %s222_s14 = int_to_ptr.vmem [resolvable:$true] %s221_s14 }
  0x10   : > { %s251_s18 = sshll.u32 %s1864_s4, 4  ;;  %s1868_s19 = smov 64   ;;  %s252_s18 = int_to_ptr.hbm [resolvable:$true] %s251_s18 }
  0x11   : > { %p1170_p9 = pneg %p1625_p8  ;;  %s1869_s20 = smov 4  }
  0x12   : > { %s1528_s21 = smov [#allocation8]   ;;  %s236_s9 = sshll.u32 %s1863_s3, 4  ;;  %s237_s9 = int_to_ptr.hbm [resolvable:$true] %s236_s9 }
  0x13   : > { %p1633_p10 = pnand %p1170_p9, %p46_p1  ;;  %s253_s22 = sshll.u32 %s1528_s21, 4  ;;  %s254_s22 = int_to_ptr.vmem [resolvable:$true] %s253_s22 }
  0x14   : > { %s219_s11 = sshll.u32 %s1873_s1, 4  ;;  %s1529_s10 = smov [#allocation7]   ;;  %s220_s11 = int_to_ptr.hbm [resolvable:$true] %s219_s11 }
  0x15   : > { %1173 = dma.hbm_to_vmem [thread:$0]  (!%p1633_p10), %s220_s11, 256, %s222_s14, [#allocation6], %s1868_s19, %s1868_s19, %s1869_s20  }
  0x16   : > { %1179 = dma.hbm_to_vmem [thread:$0]  (!%p1633_p10), %s252_s18, 128, %s254_s22, [#allocation9]  }
  0x17   : > { %s238_s13 = sshll.u32 %s1529_s10, 4  ;;  %s262_s16 = sshll.u32 %s1865_s5, 4  ;;  %s239_s13 = int_to_ptr.vmem [resolvable:$true] %s238_s13  ;;  %s263_s16 = int_to_ptr.hbm [resolvable:$true] %s262_s16 }
  0x18   : > { %s1530_s17 = smov 128   ;;  %s1531_s21 = smov 8  }
  0x19   : > { %1176 = dma.hbm_to_vmem [thread:$0]  (!%p1633_p10), %s237_s9, 512, %s239_s13, [#allocation6], %s1530_s17, %s1530_s17, %s1531_s21  }
  0x1a   : > { %s1532_s18 = smov [#allocation10]   ;;  %s1662_s23 = sadd.s32 1, %s1523_s27  }
  0x1b   : > { %s264_s22 = sshll.u32 %s1532_s18, 4  ;;  %s32_s29 = sadd.s32 1, %s1519_s26  ;;  %s265_s22 = int_to_ptr.vmem [resolvable:$true] %s264_s22 }
  0x1c   : > { %1182 = dma.hbm_to_vmem [thread:$0]  (!%p1633_p10), %s263_s16, 256, %s265_s22, [#allocation9], %s1868_s19, %s1868_s19, %s1869_s20  }
  0x1d   : > { %s29_s10 = ssub.s32 %s1523_s27, %s1662_s23  ;;  %p39_p12 = scmp.ne.s32.totalorder %s1519_s26, %s1515_s25 }
  0x1e   : > { %p30_p13 = scmp.eq.s32.totalorder %s29_s10, 0  ;;  %p40_p0 = scmp.eq.s32.totalorder %s1523_s27, 0 }
  0x1f   : > { %p1672_p3 = por %p195_p2, %p39_p12  ;;  %p1195_p5 = scmp.lt.s32.totalorder %s1523_s27, 2 }
  0x20   : > { %s1678_s13 = scalar_select %p30_p13, %s1519_s26, %s32_s29  }
  0x21   : > { %p41_p7 = por %p40_p0, %p39_p12  ;;  %s281_s15 = sand.u32 1, %s1519_s26  }
  0x22   : > { %s1090_s11 = sshll.u32 %s281_s15, 3  ;;  %s1143_s14 = sshll.u32 %s1523_s27, 3 }
  0x23   : > { %s290_s21 = scalar_lea.hbm %s1860_s0, %s1143_s14  ;;  %s285_s18 = scalar_lea.vmem [#allocation2], %s1090_s11 }
  0x24   : > { %s293_s22 = sshll.u32 %s285_s18, 4  ;;  %s291_s10 = sshll.u32 %s290_s21, 4  ;;  %s294_s22 = int_to_ptr.vmem [resolvable:$true] %s293_s22  ;;  %s292_s10 = int_to_ptr.hbm [resolvable:$true] %s291_s10 }
  0x25   : > { %p1685_p2 = pnand %p1195_p5, %p41_p7  ;;  %s282_s29 = scalar_lea.sflag [#allocation3], %s281_s15 }
  0x26   : > { %s1419_s20 = sshra.s32 %s292_s10, 4  ;;  %s1426_s16 = scalar_lea.hbm %s1860_s0, 16  ;;  %s1420_s20 = int_to_ptr.hbm [resolvable:$true] %s1419_s20 }
  0x27   : > { %s1421_s1 = scalar_lea.hbm %s1420_s20, 8  ;;  %p1423_p10 = pneg %p1685_p2 }
  0x28   : > { %p1422_p9 = scmp.ne.s32.totalorder %s1420_s20, %s1421_s1  ;;  %p1427_p0 = scmp.lt.s32.totalorder %s1420_s20, %s1860_s0 }
  0x29   : > { %p1428_p5 = scmp.lt.s32.totalorder %s1426_s16, %s1421_s1 }
  0x2a   : > { %p1424_p12 = pnand %p1423_p10, %p1422_p9 }
  0x2b   : > { %p1429_p7 = por %p1428_p5, %p1427_p0 }
  0x2c   : > { %p1425_p13 = pneg %p1424_p12 }
  0x2e   : > { %p1430_p11 = pnand %p1429_p7, %p1425_p13 }
  0x30   : > { %1433 = shalt.err (!%p1430_p11)
}
  0x31   : > { %s1878_s15 = smov 4   ;;  %s1879_s18 = smov 64  }
  0x32   : > { %1186 = dma.hbm_to_vmem [thread:$0]  (!%p1685_p2), %s292_s10, 128, %s294_s22, %s282_s29, %s1879_s18, %s1879_s18, %s1878_s15  }
  0x33   : > { %305 = sbr.rel (%p1625_p8) target bundleno = 1139 (0x473), region = 48  ;;  %s1705_s14 = sand.u32 (!%p1625_p8), 1, %s1515_s25  }
  0x34   : > { %s1094_s20 = sshll.u32 (!%p1625_p8), %s1705_s14, 3  ;;  %s308_s1 = scalar_lea.sflag (!%p1625_p8), [#allocation3], %s1705_s14 }
  0x35   : > { %s311_s11 = scalar_lea.vmem (!%p1625_p8), [#allocation2], %s1094_s20 }
  0x38   : > { %1494 = dma.done.wait (%p1612_p4), %s308_s1, 128  }
  0x39   : > { %1496 = vsyncadd (%p1612_p4), %s308_s1, 4294967168 }
  0x3a   : > { %1498 = dma.done.wait (%p46_p1), [#allocation6], 768  }
  0x3b   : > { %1500 = vsyncadd (%p46_p1), [#allocation6], 4294966528 }
  0x3c   : > { %1502 = dma.done.wait (%p46_p1), [#allocation9], 384  }
  0x3d   : > { %1504 = vsyncadd (%p46_p1), [#allocation9], 4294966912  ;;  %v1146_v0 = vld [vmem:[#allocation5 + $0x8] sm:$0xff]  ;;  %v1145_v1 = vld [vmem:[#allocation5] sm:$0xff]  ;;  %vm393_vm0 = vcmask 261120   ;;  %s1533_s19 = smov 104  }
  0x3e   : > { %403 = vmatpush.bf16.msra.mxu0 %v1146_v0  ;;  %v1144_v2 = vld [vmem:[%s311_s11] sm:$0xff]  ;;  %s1534_s22 = smov 120   ;;  %s1535_s10 = smov 96   ;;  %vm440_vm1 = vcmask 64512   ;;  %vm704_vm2 = vcmask 1043456   ;;  %vm910_vm3 = vcmask 130048  }
  0x3f   : > { %v1265_v4 = vld [vmem:[%s1862_s2] ss:$0 sm:$0xff]  ;;  %s1536_s29 = smov 112   ;;  %s1537_s16 = smov 64   ;;  %v608_v61 = vld [vmem:[#allocation7 + $0x8] sm:$0xff]  ;;  %vm913_vm4 = vcmask 195584  }
  0x40   : > { %v607_v56 = vld [vmem:[#allocation7] sm:$0xff]  ;;  %s1538_s17 = smov 8   ;;  %s1539_s21 = smov 24  }
  0x41   : > { %s1540_s15 = smov 16   ;;  %s1099_s18 = sshll.u32 %s1705_s14, 4 }
  0x42   : > { %404 = vmatpush.bf16.msra.mxu0 %v1145_v1  ;;  %s1149_s11 = sshll.u32 %s1603_s28, 4  ;;  %s362_s30 = scalar_lea.vmem [#allocation11], %s1099_s18 }
  0x43   : > { %s1469_s20 = scalar_lea.hbm %s1867_s7, 32 }
  0x45   : > { %1112 = vmatmul.msk.bf16.vlgmr.msra.gmra.mxu0 %vm393_vm0, %v1144_v2 }
  0xc2   : > { %v406_v3 = vpop.f32.mrf.mxu0 }
  0xc3   : > { %v407_v5 = vadd.f32 %v1265_v4, %v406_v3 }
  0xc5   : > { %v411_v7 = vpack.c.bf16 %v407_v5, %v407_v5 }
  0xc7   : > { %v415_v10 = vunpack.c.l.b16 %v411_v7 }
  0xc9   : > { %v430_v25 = vpack.c.b16 %v415_v10, %v415_v10 }
  0xca   : > { %v408_v6 = vpop.f32.mrf.mxu0 }
  0xcb   : > { %v409_v8 = vadd.f32 %v1265_v4, %v408_v6  ;;  %v610_v6 = vld [vmem:[#allocation7 + $0x18] sm:$0xff] }
  0xcd   : > { %v412_v9 = vpack.c.bf16 %v409_v8, %v409_v8 }
  0xcf   : > { %v416_v11 = vunpack.c.l.b16 %v412_v9 }
  0xd1   : > { %v417_v12 = vpack.c.b16 %v416_v11, %v415_v10  ;;  %v431_v13 = vpack.c.b16 %v416_v11, %v416_v11 }
  0xd3   : > { %422 = vrot.lane.b32.xlu1 %v417_v12, %s1533_s19  ;;  %418 = vrot.lane.b32.xlu0 %v417_v12, %s1534_s22  ;;  %s968_s22 = scalar_lea.hbm %s1867_s7, %s1149_s11 }
  0xdb   : > { %460 = vrot.lane.b32.xlu1 %v431_v13, %s1535_s10  ;;  %420 = vrot.lane.b32.xlu0 %v417_v12, %s1536_s29  ;;  %s971_s29 = sshll.u32 %s968_s22, 4  ;;  %s972_s29 = int_to_ptr.hbm [resolvable:$true] %s971_s29 }
 0x145   : > { %v423_v14 = vpop.permute.xlu1 %422  ;;  %v419_v15 = vpop.permute.xlu0 %418 }
 0x146   : > { %v424_v16 = vunpack.c.l.b16 %v419_v15  ;;  %v425_v17 = vunpack.c.h.b16 %v419_v15  ;;  %v428_v28 = vunpack.c.l.b16 %v423_v14  ;;  %v429_v29 = vunpack.c.h.b16 %v423_v14  ;;  %v609_v14 = vld [vmem:[#allocation7 + $0x10] sm:$0xff] }
 0x148   : > { %v432_v18 = vpack.c.b16 %v424_v16, %v424_v16  ;;  %v433_v19 = vpack.c.b16 %v425_v17, %v425_v17  ;;  %v1736_v30 = vpack.c.b16 %v428_v28, %v428_v28  ;;  %v1738_v31 = vpack.c.b16 %v429_v29, %v429_v29 }
 0x14a   : > { %502 = vrot.lane.b32.xlu0 %v433_v19, %s1535_s10  ;;  %481 = vrot.lane.b32.xlu2 %v432_v18, %s1535_s10 }
 0x14d   : > { %v461_v20 = vpop.permute.xlu1 %460  ;;  %v421_v21 = vpop.permute.xlu0 %420 }
 0x14e   : > { %v426_v22 = vunpack.c.l.b16 %v421_v21  ;;  %v427_v23 = vunpack.c.h.b16 %v421_v21  ;;  %v466_v24 = vsel %vm440_vm1, %v461_v20, 0 }
 0x14f   : > { %475 = vmatpush.bf16.xpose.msra.mxu2 %v466_v24 }
 0x150   : > { %v1729_v26 = vpack.c.b16 %v426_v22, %v426_v22  ;;  %v435_v27 = vpack.c.b16 %v427_v23, %v427_v23 }
 0x152   : > { %438 = vrot.lane.b32.xlu2 %v430_v25, %s1535_s10  ;;  %544 = vrot.lane.b32.xlu1 %v435_v27, %s1535_s10 }
 0x153   : > { %523 = vrot.lane.b32.xlu0 %v1729_v26, %s1535_s10 }
 0x156   : > { %1114 = vmatmul.msk.bf16.vlgmr.msra.gmra.mxu2 %vm440_vm1, %v431_v13 }
 0x15a   : > { %565 = vrot.lane.b32.xlu2 %v1736_v30, %s1535_s10  ;;  %586 = vrot.lane.b32.xlu1 %v1738_v31, %s1535_s10  ;;  %s969_s10 = sshll.u32 %s362_s30, 4  ;;  %s970_s10 = int_to_ptr.vmem [resolvable:$true] %s969_s10 }
 0x15b   : > { %742 = vrot.lane.b32.xlu0 %v432_v18, %s1537_s16 }
 0x162   : > { %721 = vrot.lane.b32.xlu2 %v431_v13, %s1537_s16  ;;  %699 = vrot.lane.b32.xlu1 %v430_v25, %s1537_s16 }
 0x163   : > { %805 = vrot.lane.b32.xlu0 %v435_v27, %s1537_s16 }
 0x16a   : > { %763 = vrot.lane.b32.xlu2 %v433_v19, %s1537_s16 }
 0x1a4   : > { %v482_v32 = vpop.permute.xlu2 %481 }
 0x1a5   : > { %v487_v33 = vsel %vm440_vm1, %v482_v32, 0 }
 0x1a6   : > { %496 = vmatpush.bf16.xpose.msra.mxu3 %v487_v33 }
 0x1ac   : > { %v439_v34 = vpop.permute.xlu2 %438 }
 0x1ad   : > { %1115 = vmatmul.msk.bf16.vlgmr.msra.gmra.mxu3 %vm440_vm1, %v432_v18  ;;  %v445_v35 = vsel %vm440_vm1, %v439_v34, 0 }
 0x1ae   : > { %454 = vmatpush.bf16.xpose.msra.mxu1 %v445_v35 }
 0x1b4   : > { %v566_v36 = vpop.permute.xlu2 %565 }
 0x1b5   : > { %1113 = vmatmul.msk.bf16.vlgmr.msra.gmra.mxu1 %vm440_vm1, %v430_v25  ;;  %v571_v37 = vsel %vm440_vm1, %v566_v36, 0 }
 0x1b6   : > { %580 = vmatpush.bf16.xpose.msrb.mxu3 %v571_v37 }
 0x1bc   : > { %v503_v38 = vpop.permute.xlu0 %502  ;;  %v722_v40 = vpop.permute.xlu2 %721 }
 0x1bd   : > { %1119 = vmatmul.msk.bf16.vlgmr.msrb.gmra.mxu3 %vm440_vm1, %v1736_v30  ;;  %v508_v39 = vsel %vm440_vm1, %v503_v38, 0  ;;  %v727_v44 = vsel %vm704_vm2, %v722_v40, 0 }
 0x1be   : > { %517 = vmatpush.bf16.xpose.msrb.mxu0 %v508_v39 }
 0x1c4   : > { %v545_v41 = vpop.permute.xlu1 %544  ;;  %v764_v46 = vpop.permute.xlu2 %763 }
 0x1c5   : > { %v524_v42 = vpop.permute.xlu0 %523  ;;  %1116 = vmatmul.msk.bf16.vlgmr.msrb.gmra.mxu0 %vm440_vm1, %v433_v19  ;;  %v550_v43 = vsel %vm440_vm1, %v545_v41, 0  ;;  %v769_v50 = vsel %vm704_vm2, %v764_v46, 0 }
 0x1c6   : > { %v529_v45 = vsel %vm440_vm1, %v524_v42, 0  ;;  %559 = vmatpush.bf16.xpose.msrb.mxu2 %v550_v43 }
 0x1c7   : > { %538 = vmatpush.bf16.xpose.msrb.mxu1 %v529_v45 }
 0x1cc   : > { %v587_v47 = vpop.permute.xlu1 %586 }
 0x1cd   : > { %v592_v48 = vsel %vm440_vm1, %v587_v47, 0  ;;  %v743_v49 = vpop.permute.xlu0 %742  ;;  %1118 = vmatmul.msk.bf16.vlgmr.msrb.gmra.mxu2 %vm440_vm1, %v435_v27 }
 0x1ce   : > { %736 = vmatpush.bf16.msra.mxu2 %v727_v44  ;;  %v748_v51 = vsel %vm704_vm2, %v743_v49, 0  ;;  %1117 = vmatmul.msk.bf16.vlgmr.msrb.gmra.mxu1 %vm440_vm1, %v1729_v26 }
 0x1cf   : > { %601 = vmatpush.bf16.xpose.msra.mxu0 %v592_v48  ;;  %757 = vmatpush.bf16.msra.mxu3 %v748_v51 }
 0x1d4   : > { %v700_v52 = vpop.permute.xlu1 %699 }
 0x1d5   : > { %v706_v53 = vsel %vm704_vm2, %v700_v52, 0  ;;  %v806_v54 = vpop.permute.xlu0 %805 }
 0x1d6   : > { %1120 = vmatmul.msk.bf16.vlgmr.msra.gmra.mxu0 %vm440_vm1, %v1738_v31  ;;  %v811_v55 = vsel %vm704_vm2, %v806_v54, 0  ;;  %715 = vmatpush.bf16.msra.mxu1 %v706_v53 }
 0x1d7   : > { %778 = vmatpush.bf16.msrb.mxu0 %v769_v50  ;;  %820 = vmatpush.bf16.msrb.mxu2 %v811_v55 }
 0x1d9   : > { %v477_v57 = vpop.f32.mrf.mxu2 }
 0x1da   : > { %v612_v58 = vadd.f32 %v607_v56, %v477_v57 }
 0x1dc   : > { %v622_v59 = vsel %vm440_vm1, %v612_v58, -inf }
 0x1dd   : > { %623 = vmax.xlane.f32.xlu2 %v622_v59 }
 0x1e1   : > { %v479_v60 = vpop.f32.mrf.mxu2 }
 0x230   : > { %v498_v62 = vpop.f32.mrf.mxu3 }
 0x231   : > { %v613_v63 = vadd.f32 %v608_v61, %v498_v62 }
 0x232   : > { %v456_v0 = vpop.f32.mrf.mxu1 }
 0x233   : > { %v611_v1 = vadd.f32 %v607_v56, %v456_v0  ;;  %v625_v2 = vsel %vm440_vm1, %v613_v63, -inf }
 0x234   : > { %626 = vmax.xlane.f32.xlu0 %v625_v2 }
 0x235   : > { %v619_v3 = vsel %vm440_vm1, %v611_v1, -inf }
 0x236   : > { %620 = vmax.xlane.f32.xlu1 %v619_v3 }
 0x238   : > { %v500_v4 = vpop.f32.mrf.mxu3 }
 0x23a   : > { %v458_v5 = vpop.f32.mrf.mxu1 }
 0x240   : > { %v582_v7 = vpop.f32.mrf.mxu3 }
 0x241   : > { %v617_v8 = vadd.f32 %v610_v6, %v582_v7 }
 0x242   : > { %v519_v9 = vpop.f32.mrf.mxu0 }
 0x243   : > { %v614_v10 = vadd.f32 %v608_v61, %v519_v9  ;;  %v637_v11 = vsel %vm440_vm1, %v617_v8, -inf }
 0x244   : > { %638 = vmax.xlane.f32.xlu0 %v637_v11 }
 0x245   : > { %v628_v12 = vsel %vm440_vm1, %v614_v10, -inf }
 0x246   : > { %629 = vmax.xlane.f32.xlu2 %v628_v12 }
 0x248   : > { %v584_v13 = vpop.f32.mrf.mxu3 }
 0x24a   : > { %v521_v15 = vpop.f32.mrf.mxu0 }
 0x24b   : > { %v540_v16 = vpop.f32.mrf.mxu1 }
 0x24c   : > { %v615_v17 = vadd.f32 %v609_v14, %v540_v16 }
 0x24e   : > { %v631_v18 = vsel %vm440_vm1, %v615_v17, -inf }
 0x24f   : > { %632 = vmax.xlane.f32.xlu2 %v631_v18 }
 0x250   : > { %v624_v19 = vpop.xlane.xlu2 %623  ;;  %v561_v20 = vpop.f32.mrf.mxu2 }
 0x251   : > { %v644_v21 = vsub.f32 %v612_v58, %v624_v19  ;;  %v616_v22 = vadd.f32 %v609_v14, %v561_v20 }
 0x253   : > { %v603_v23 = vpop.f32.mrf.mxu0  ;;  %v653_v24 = vmul.f32 1.442695, %v644_v21  ;;  %v542_v25 = vpop.f32.mrf.mxu1  ;;  %v634_v27 = vsel %vm440_vm1, %v616_v22, -inf }
 0x254   : > { %635 = vmax.xlane.f32.xlu1 %v634_v27  ;;  %v1778_v28 = vadd.f32 %v610_v6, %v603_v23 }
 0x255   : > { %1267 = vpow2.f32 %v653_v24 }
 0x256   : > { %v640_v34 = vsel %vm440_vm1, %v1778_v28, -inf }
 0x258   : > { %v563_v29 = vpop.f32.mrf.mxu2  ;;  %847 = vrot.lane.b32.xlu0 %v1738_v31, %s1537_s16 }
 0x25b   : > { %v605_v32 = vpop.f32.mrf.mxu0  ;;  %v1782_v33 = vpop.eup %1267 }
 0x25c   : > { %v692_v35 = vpack.c.bf16 %v1782_v33, %v1782_v33  ;;  %641 = vmax.xlane.f32.xlu1 %v640_v34 }
 0x25e   : > { %1122 = vmatmul.msk.bf16.vlgmr.msra.gmra.mxu2 %vm440_vm1, %v692_v35 }
 0x267   : > { %826 = vrot.lane.b32.xlu2 %v1736_v30, %s1537_s16 }
 0x275   : > { %784 = vrot.lane.b32.xlu1 %v1729_v26, %s1537_s16  ;;  %s957_s16 = scalar_lea.sflag [#allocation4], %s1705_s14 }
 0x2a7   : > { %v627_v36 = vpop.xlane.xlu0 %626 }
 0x2a8   : > { %v645_v31 = vsub.f32 %v613_v63, %v627_v36 }
 0x2a9   : > { %v621_v37 = vpop.xlane.xlu1 %620 }
 0x2aa   : > { %v655_v38 = vmul.f32 1.442695, %v645_v31  ;;  %v643_v39 = vsub.f32 %v611_v1, %v621_v37 }
 0x2ac   : > { %1269 = vpow2.f32 %v655_v38  ;;  %v651_v40 = vmul.f32 1.442695, %v643_v39 }
 0x2ae   : > { %1271 = vpow2.f32 %v651_v40 }
 0x2b2   : > { %v1270_v41 = vpop.eup %1269 }
 0x2b3   : > { %v693_v42 = vpack.c.bf16 %v1270_v41, %v1270_v41  ;;  %v673_v43 = vsel %vm440_vm1, %v1270_v41, 0.0 }
 0x2b4   : > { %v1272_v44 = vpop.eup %1271  ;;  %674 = vadd.xlane.f32.xlu0 %v673_v43 }
 0x2b5   : > { %v691_v45 = vpack.c.bf16 %v1272_v44, %v1272_v44  ;;  %1123 = vmatmul.msk.bf16.vlgmr.msra.gmra.mxu3 %vm440_vm1, %v693_v42  ;;  %v667_v11 = vsel %vm440_vm1, %v1272_v44, 0.0 }
 0x2b7   : > { %1121 = vmatmul.msk.bf16.vlgmr.msra.gmra.mxu1 %vm440_vm1, %v691_v45  ;;  %v639_v26 = vpop.xlane.xlu0 %638 }
 0x2b8   : > { %v649_v47 = vsub.f32 %v617_v8, %v639_v26 }
 0x2b9   : > { %v630_v30 = vpop.xlane.xlu2 %629 }
 0x2ba   : > { %v646_v46 = vsub.f32 %v614_v10, %v630_v30  ;;  %v663_v49 = vmul.f32 1.442695, %v649_v47  ;;  %v670_v10 = vsel %vm440_vm1, %v1782_v33, 0.0 }
 0x2bc   : > { %v657_v48 = vmul.f32 1.442695, %v646_v46 }
 0x2be   : > { %1273 = vpow2.f32 %v657_v48 }
 0x2bf   : > { %1275 = vpow2.f32 %v663_v49 }
 0x2c2   : > { %v633_v50 = vpop.xlane.xlu2 %632 }
 0x2c3   : > { %v647_v51 = vsub.f32 %v615_v17, %v633_v50 }
 0x2c4   : > { %v1274_v52 = vpop.eup %1273 }
 0x2c5   : > { %v694_v53 = vpack.c.bf16 %v1274_v52, %v1274_v52  ;;  %v659_v54 = vmul.f32 1.442695, %v647_v51  ;;  %v676_v55 = vsel %vm440_vm1, %v1274_v52, 0.0  ;;  %v1276_v58 = vpop.eup %1275 }
 0x2c6   : > { %677 = vadd.xlane.f32.xlu2 %v676_v55  ;;  %v697_v1 = vpack.c.bf16 %v1276_v58, %v1276_v58  ;;  %v685_v2 = vsel %vm440_vm1, %v1276_v58, 0.0  ;;  %v1148_v55 = vld [vmem:[#allocation10 + $0x8] sm:$0xff] }
 0x2c7   : > { %1277 = vpow2.f32 %v659_v54  ;;  %v636_v56 = vpop.xlane.xlu1 %635  ;;  %1124 = vmatmul.msk.bf16.vlgmr.msrb.gmra.mxu0 %vm440_vm1, %v694_v53 }
 0x2c8   : > { %v648_v57 = vsub.f32 %v616_v22, %v636_v56  ;;  %v1147_v56 = vld [vmem:[#allocation10] sm:$0xff] }
 0x2ca   : > { %v661_v59 = vmul.f32 1.442695, %v648_v57  ;;  %v827_v60 = vpop.permute.xlu2 %826  ;;  %v848_v61 = vpop.permute.xlu0 %847 }
 0x2cb   : > { %v832_v62 = vsel %vm704_vm2, %v827_v60, 0  ;;  %v853_v63 = vsel %vm704_vm2, %v848_v61, 0 }
 0x2cc   : > { %1279 = vpow2.f32 %v661_v59  ;;  %841 = vmatpush.bf16.msrb.mxu3 %v832_v62  ;;  %862 = vmatpush.bf16.msra.mxu0 %v853_v63 }
 0x2cd   : > { %v1278_v0 = vpop.eup %1277 }
 0x2ce   : > { %v679_v3 = vsel %vm440_vm1, %v1278_v0, 0.0  ;;  %686 = vadd.xlane.f32.xlu2 %v685_v2  ;;  %v695_v19 = vpack.c.bf16 %v1278_v0, %v1278_v0 }
 0x2cf   : > { %680 = vadd.xlane.f32.xlu1 %v679_v3  ;;  %1127 = vmatmul.msk.bf16.vlgmr.msrb.gmra.mxu3 %vm440_vm1, %v697_v1  ;;  %v642_v4 = vpop.xlane.xlu1 %641 }
 0x2d0   : > { %v650_v5 = vsub.f32 %v1778_v28, %v642_v4 }
 0x2d2   : > { %v1280_v6 = vpop.eup %1279  ;;  %v665_v7 = vmul.f32 1.442695, %v650_v5 }
 0x2d3   : > { %v696_v8 = vpack.c.bf16 %v1280_v6, %v1280_v6  ;;  %v682_v9 = vsel %vm440_vm1, %v1280_v6, 0.0 }
 0x2d4   : > { %1281 = vpow2.f32 %v665_v7  ;;  %683 = vadd.xlane.f32.xlu0 %v682_v9 }
 0x2d5   : > { %1126 = vmatmul.msk.bf16.vlgmr.msrb.gmra.mxu2 %vm440_vm1, %v696_v8 }
 0x2d6   : > { %671 = vadd.xlane.f32.xlu2 %v670_v10 }
 0x2d7   : > { %668 = vadd.xlane.f32.xlu1 %v667_v11 }
 0x2da   : > { %v1282_v12 = vpop.eup %1281 }
 0x2db   : > { %v698_v13 = vpack.c.bf16 %v1282_v12, %v1282_v12  ;;  %v688_v14 = vsel %vm440_vm1, %v1282_v12, 0.0 }
 0x2dc   : > { %689 = vadd.xlane.f32.xlu0 %v688_v14 }
 0x2dd   : > { %1128 = vmatmul.msk.bf16.vlgmr.msra.gmra.mxu0 %vm440_vm1, %v698_v13 }
 0x2e1   : > { %v1811_v15 = vpop.f32.mrf.mxu2 }
 0x2e7   : > { %v785_v16 = vpop.permute.xlu1 %784 }
 0x2e8   : > { %v790_v17 = vsel %vm704_vm2, %v785_v16, 0 }
 0x2e9   : > { %v740_v18 = vpop.f32.mrf.mxu2  ;;  %799 = vmatpush.bf16.msrb.mxu1 %v790_v17 }
 0x2ec   : > { %1125 = vmatmul.msk.bf16.vlgmr.msrb.gmra.mxu1 %vm440_vm1, %v695_v19 }
 0x2ed   : > { %946 = vmatpush.bf16.msra.mxu1 %v1148_v55 }
 0x2f1   : > { %947 = vmatpush.bf16.msra.mxu1 %v1147_v56 }
 0x327   : > { %v675_v22 = vpop.xlane.xlu0 %674 }
 0x328   : > { %1283 = vrcp.f32 %v675_v22 }
 0x32e   : > { %v1284_v27 = vpop.eup %1283 }
 0x334   : > { %v717_v20 = vpop.f32.mrf.mxu1 }
 0x338   : > { %v759_v21 = vpop.f32.mrf.mxu3 }
 0x339   : > { %v678_v23 = vpop.xlane.xlu2 %677  ;;  %v878_v32 = vmul.f32 %v1284_v27, %v759_v21 }
 0x33a   : > { %1285 = vrcp.f32 %v678_v23 }
 0x33c   : > { %v719_v24 = vpop.f32.mrf.mxu1 }
 0x340   : > { %v761_v25 = vpop.f32.mrf.mxu3  ;;  %v1286_v28 = vpop.eup %1285 }
 0x341   : > { %v687_v31 = vpop.xlane.xlu2 %686 }
 0x342   : > { %1287 = vrcp.f32 %v687_v31  ;;  %v681_v30 = vpop.xlane.xlu1 %680 }
 0x344   : > { %v780_v29 = vpop.f32.mrf.mxu0 }
 0x345   : > { %v879_v33 = vmul.f32 %v1286_v28, %v780_v29 }
 0x347   : > { %v1250_v34 = vpack.i.bf16 %v879_v33, %v878_v32  ;;  %v684_v35 = vpop.xlane.xlu0 %683 }
 0x348   : > { %v1288_v40 = vpop.eup %1287 }
 0x349   : > { %1251 = vrot.lane.b32.xlu0 %v1250_v34, %s1538_s17  ;;  %v672_v57 = vpop.xlane.xlu2 %671 }
 0x34a   : > { %v669_v58 = vpop.xlane.xlu1 %668 }
 0x34c   : > { %v782_v36 = vpop.f32.mrf.mxu0 }
 0x34f   : > { %v690_v37 = vpop.xlane.xlu0 %689 }
 0x350   : > { %1289 = vrcp.f32 %v690_v37 }
 0x351   : > { %1291 = vrcp.f32 %v681_v30 }
 0x352   : > { %v843_v38 = vpop.f32.mrf.mxu3  ;;  %1293 = vrcp.f32 %v684_v35 }
 0x353   : > { %v882_v44 = vmul.f32 %v1288_v40, %v843_v38  ;;  %1295 = vrcp.f32 %v672_v57 }
 0x354   : > { %1297 = vrcp.f32 %v669_v58 }
 0x356   : > { %v1290_v41 = vpop.eup %1289 }
 0x357   : > { %v1292_v48 = vpop.eup %1291 }
 0x358   : > { %v822_v39 = vpop.f32.mrf.mxu2  ;;  %v1294_v49 = vpop.eup %1293 }
 0x359   : > { %v881_v51 = vmul.f32 %v1294_v49, %v822_v39  ;;  %v1296_v60 = vpop.eup %1295 }
 0x35a   : > { %v845_v42 = vpop.f32.mrf.mxu3  ;;  %v864_v43 = vpop.f32.mrf.mxu0  ;;  %v877_v2 = vmul.f32 %v1296_v60, %v1811_v15  ;;  %v1266_v15 = vld [vmem:[%s1866_s6] ss:$0 sm:$0xff] }
 0x35b   : > { %v883_v45 = vmul.f32 %v1290_v41, %v864_v43  ;;  %v1298_v61 = vpop.eup %1297 }
 0x35c   : > { %v876_v1 = vmul.f32 %v1298_v61, %v717_v20 }
 0x35d   : > { %v1260_v26 = vpack.i.bf16 %v883_v45, %v882_v44 }
 0x35f   : > { %1261 = vrot.lane.b32.xlu2 %v1260_v26, %s1539_s21  ;;  %s1463_s21 = sshra.s32 %s972_s29, 4  ;;  %s1464_s21 = int_to_ptr.hbm [resolvable:$true] %s1463_s21 }
 0x360   : > { %v824_v46 = vpop.f32.mrf.mxu2  ;;  %s1465_s28 = scalar_lea.hbm %s1464_s21, 16  ;;  %p1470_p11 = scmp.lt.s32.totalorder %s1464_s21, %s1867_s7 }
 0x361   : > { %p1466_p1 = scmp.ne.s32.totalorder %s1464_s21, %s1465_s28  ;;  %p1471_p2 = scmp.lt.s32.totalorder %s1469_s20, %s1465_s28 }
 0x362   : > { %v866_v47 = vpop.f32.mrf.mxu0 }
 0x363   : > { %p1467_p4 = pnand %p1466_p1, %p1672_p3  ;;  %p1472_p9 = por %p1471_p2, %p1470_p11 }
 0x365   : > { %p1468_p8 = pneg %p1467_p4 }
 0x367   : > { %p1473_p10 = pnand %p1472_p9, %p1468_p8 }
 0x369   : > { %v801_v50 = vpop.f32.mrf.mxu1 }
 0x36a   : > { %v880_v52 = vmul.f32 %v1292_v48, %v801_v50 }
 0x36c   : > { %v1255_v53 = vpack.i.bf16 %v881_v51, %v880_v52 }
 0x36e   : > { %1256 = vrot.lane.b32.xlu1 %v1255_v53, %s1540_s15 }
 0x371   : > { %v803_v54 = vpop.f32.mrf.mxu1 }
 0x3b9   : > { %v1262_v0 = vpop.permute.xlu2 %1261 }
 0x3ba   : > { %v1264_v6 = vunpack.i.h.bf16 %v1262_v0  ;;  %v1263_v7 = vunpack.i.l.bf16 %v1262_v0 }
 0x3bb   : > { %v1252_v59 = vpop.permute.xlu0 %1251 }
 0x3bc   : > { %v1254_v62 = vunpack.i.h.bf16 %v1252_v59  ;;  %v1253_v63 = vunpack.i.l.bf16 %v1252_v59 }
 0x3be   : > { %v909_v8 = vsel %vm440_vm1, %v877_v2, %v1254_v62  ;;  %v908_v9 = vsel %vm440_vm1, %v876_v1, %v1253_v63 }
 0x3e0   : > { %v1257_v3 = vpop.permute.xlu1 %1256 }
 0x3e1   : > { %v1259_v4 = vunpack.i.h.bf16 %v1257_v3  ;;  %v1258_v5 = vunpack.i.l.bf16 %v1257_v3 }
 0x3e3   : > { %v911_v10 = vsel %vm910_vm3, %v908_v9, %v1258_v5  ;;  %v912_v11 = vsel %vm910_vm3, %v909_v8, %v1259_v4 }
 0x3e4   : > { %v914_v12 = vsel %vm913_vm4, %v911_v10, %v1263_v7  ;;  %v915_v13 = vsel %vm913_vm4, %v912_v11, %v1264_v6 }
 0x3e5   : > { %v916_v14 = vpack.c.bf16 %v915_v13, %v914_v12 }
 0x3e7   : > { %1137 = vmatmul.msk.bf16.vlgmr.msra.gmra.mxu1 %vm393_vm0, %v916_v14 }
 0x464   : > { %v949_v16 = vpop.f32.mrf.mxu1 }
 0x465   : > { %v950_v17 = vadd.f32 %v1266_v15, %v949_v16 }
 0x467   : > { %954 = vst.msk [vmem:[%s362_s30] sm:$0xff] %vm393_vm0, %v950_v17 }
 0x46c   : > { %v951_v18 = vpop.f32.mrf.mxu1 }
 0x46d   : > { %v952_v19 = vadd.f32 %v1266_v15, %v951_v18 }
 0x46f   : > { %955 = vst.msk [vmem:[%s362_s30 + $0x8] sm:$0xff] %vm393_vm0, %v952_v19 }
 0x470   : > { %1476 = shalt.err (!%p1473_p10)
}
 0x471   : > { %s1541_s14 = smov 128  }
 0x472   : > { %1168 = dma.vmem_to_hbm [thread:$0]  (%p1672_p3), %s970_s10, 256, %s972_s29, %s957_s16, %s1541_s14, %s1541_s14, %s1538_s17  }
 0x473 PF: > { %s986_s30 = sand.u32 1, %s1511_s24   ;;  %p1880_p12 = scmp.ge.s32.totalorder %s1523_s27, 2 }
 0x474   : > { %s987_s12 = scalar_lea.sflag [#allocation4], %s986_s30 }
 0x475   : > { %p1188_p13 = pnand %p1880_p12, %p1617_p6 }
 0x477   : > { %p1189_p0 = pneg %p1188_p13 }
 0x479   : > { %1506 = dma.done.wait (%p1189_p0), %s987_s12, 256  }
 0x47a   : > { %1508 = vsyncadd (%p1189_p0), %s987_s12, 4294967040  ;;  %p22_p5 = scmp.ge.s32.totalorder %s1662_s23, 4   ;;  %s1881_s24 = smov %s1515_s25 }
 0x47b   : > { %s1882_s25 = smov %s1519_s26  ;;  %s1883_s26 = smov %s1678_s13 }
 0x47c   : > { %s1884_s27 = smov %s1662_s23  ;;  %24 = sbr.rel (!%p22_p5) target bundleno = 9 (0x9), region = 109 }
 0x481   :  { %993 = vsyncpa [#allocation3], 1 }
 0x482   :  { %995 = vsyncpa [#allocation3 + $0x1], 1 }
 0x483   :  { %996 = vsyncpa [#allocation6], 1 }
 0x484   :  { %997 = vsyncpa [#allocation9], 1 }
 0x485   :  { %998 = vsyncpa [#allocation4], 1 }
 0x486   :  { %1000 = vsyncpa [#allocation4 + $0x1], 1 }

</bundles_post_ra>
